<compile_context>
chip_gen: v7x
topology: tpu7x:2x2x1
jax: 0.10.0
libtpu: 0.0.40
codegen_flags: <defaults>
</compile_context>

<pallas_src>
import math

import jax
import jax.numpy as jnp
from jax.experimental import pallas as pl
from jax.experimental.pallas import tpu as pltpu


def _round_up(n, m):
    return ((n + m - 1) // m) * m


def _pad2(a, shape):
    """Zero-pad a 2-D array up to `shape`."""
    return jnp.pad(a, ((0, shape[0] - a.shape[0]), (0, shape[1] - a.shape[1])))


def decoder_kernel(x_ref, w1_ref, b1_ref, w2_ref, b2_ref, w3_ref, b3_ref, o_ref, h2_ref):
    # Grid: (batch tile i, fc3 output-column tile j); j is the inner (arbitrary) axis.
    # Compute h2 for this batch tile once, on the first column tile.
    @pl.when(pl.program_id(1) == 0)
    def _():
        x = x_ref[...]                      # (tm, K1) f32, K1 tiny (=2)
        w1 = w1_ref[...]                    # (K1, L1_pad) f32
        # K=2 contraction: broadcast-FMA on the VPU, avoids an MXU round trip.
        h1 = b1_ref[...] + x[:, 0:1] * w1[0:1, :]
        for k in range(1, x.shape[1]):      # static, tiny K
            h1 = h1 + x[:, k:k + 1] * w1[k:k + 1, :]
        h1 = jnp.maximum(h1, 0.0)           # ReLU
        h2 = jnp.dot(h1, w2_ref[...], preferred_element_type=jnp.float32) + b2_ref[...]
        # Store as bf16 once; it is re-read (already in MXU input dtype) for every j tile.
        h2_ref[...] = jnp.maximum(h2, 0.0).astype(h2_ref.dtype)

    # fc3 column tile j: bf16 x bf16 -> f32 accumulate on the MXU, then sigmoid.
    z = jnp.dot(h2_ref[...], w3_ref[...], preferred_element_type=jnp.float32) + b3_ref[...]
    o_ref[...] = jax.nn.sigmoid(z)


def decoder_forward(x, params, *, tn=128):
    """x: [B, input_dim] float32. params: dict of w1,b1,w2,b2,w3,b3 at logical shapes.

    Weights are [in_features, out_features] (transposed vs. PyTorch nn.Linear); biases
    are [1, out_features]. tn is the fc3 output-column tile (use 256 on v6e/v7x once the
    kernel is compute-bound; 128 is fine while it is overhead/DMA-bound).
    """
    w1, b1, w2, b2, w3, b3 = (params[k] for k in ("w1", "b1", "w2", "b2", "w3", "b3"))
    in_dim = w1.shape[0]
    l1, l2, out_dim = w1.shape[1], w2.shape[1], w3.shape[1]

    # Lane-align the feature dims.
    L1 = _round_up(l1, 128)
    L2 = _round_up(l2, 128)
    N = _round_up(out_dim, max(tn, 128))

    w1p = _pad2(w1, (in_dim, L1))
    b1p = _pad2(b1, (1, L1))
    w2p = _pad2(w2, (L1, L2))
    b2p = _pad2(b2, (1, L2))
    w3p = _pad2(w3, (L2, N)).astype(jnp.bfloat16)   # halve the dominant HBM transfer
    b3p = _pad2(b3, (1, N))

    # Batch tiling: pad to a sublane multiple; tile at 128 rows once the batch is large.
    B = x.shape[0]
    Bp = _round_up(B, 8)
    if Bp > 128:
        tm = 128
        Bp = _round_up(Bp, tm)
    else:
        tm = Bp
    xp = _pad2(x, (Bp, in_dim))

    grid = (Bp // tm, N // tn)

    out = pl.pallas_call(
        decoder_kernel,
        out_shape=jax.ShapeDtypeStruct((Bp, N), jnp.float32),
        grid=grid,
        in_specs=[
            pl.BlockSpec((tm, in_dim), lambda i, j: (i, 0)),   # x (per batch tile)
            pl.BlockSpec((in_dim, L1), lambda i, j: (0, 0)),   # w1 (resident)
            pl.BlockSpec((1, L1), lambda i, j: (0, 0)),        # b1
            pl.BlockSpec((L1, L2), lambda i, j: (0, 0)),       # w2 (resident)
            pl.BlockSpec((1, L2), lambda i, j: (0, 0)),        # b2
            pl.BlockSpec((L2, tn), lambda i, j: (0, j)),       # w3 column tile (pipelined)
            pl.BlockSpec((1, tn), lambda i, j: (0, j)),        # b3 column tile
        ],
        out_specs=pl.BlockSpec((tm, tn), lambda i, j: (i, j)),
        scratch_shapes=[pltpu.VMEM((tm, L2), jnp.bfloat16)],   # h2, persists across j
        compiler_params=pltpu.CompilerParams(
            dimension_semantics=("parallel", "arbitrary"),     # batch parallel (v7x megacore)
            vmem_limit_bytes=16 << 20,                         # ~2 MB working set; leave headroom
        ),
    )(xp, w1p, b1p, w2p, b2p, w3p, b3p)

    return out[:B, :out_dim]


def init_linear(key, fan_in, fan_out):
    # Matches PyTorch nn.Linear default init: U(-1/sqrt(fan_in), 1/sqrt(fan_in)).
    kw, kb = jax.random.split(key)
    bound = 1.0 / math.sqrt(fan_in)
    w = jax.random.uniform(kw, (fan_in, fan_out), jnp.float32, -bound, bound)
    b = jax.random.uniform(kb, (1, fan_out), jnp.float32, -bound, bound)
    return w, b


def make_params(key, input_dim=2, layer_1=100, layer_2=500, output_dim=784):
    k1, k2, k3 = jax.random.split(key, 3)
    w1, b1 = init_linear(k1, input_dim, layer_1)
    w2, b2 = init_linear(k2, layer_1, layer_2)
    w3, b3 = init_linear(k3, layer_2, output_dim)
    return {"w1": w1, "b1": b1, "w2": w2, "b2": b2, "w3": w3, "b3": b3}


def reference_forward(x, p):
    """Pure-JAX reference matching the kernel's numerics (fc3 in bf16 x bf16 -> f32)."""
    h1 = jnp.maximum(x @ p["w1"] + p["b1"], 0.0)
    h2 = jnp.maximum(h1 @ p["w2"] + p["b2"], 0.0)
    z = jnp.dot(h2.astype(jnp.bfloat16), p["w3"].astype(jnp.bfloat16),
                preferred_element_type=jnp.float32) + p["b3"]
    return jax.nn.sigmoid(z)


if __name__ == "__main__":
    key = jax.random.PRNGKey(0)
    k_params, k_x = jax.random.split(key)

    params = make_params(k_params, input_dim=2, layer_1=100, layer_2=500, output_dim=784)
    x = jax.random.normal(k_x, (8, 2), jnp.float32)  # batch=8, latent dim=2

    out = decoder_forward(x, params)
    out = jax.block_until_ready(out)

    ref = reference_forward(x, params)
    assert out.shape == (8, 784) and out.dtype == jnp.float32
    assert jnp.allclose(out, ref, atol=5e-4, rtol=1e-5), "mismatch vs reference"

    print("KERNEL_OK")
</pallas_src>

<mosaic_0001>
module attributes {stable_mosaic.version = 11 : i64} {
  func.func @decoder_kernel(%arg0: i32, %arg1: i32, %arg2: memref<8x2xf32, #tpu.memory_space<vmem>>, %arg3: memref<2x128xf32, #tpu.memory_space<vmem>>, %arg4: memref<1x128xf32, #tpu.memory_space<vmem>>, %arg5: memref<128x512xf32, #tpu.memory_space<vmem>>, %arg6: memref<1x512xf32, #tpu.memory_space<vmem>>, %arg7: memref<512x128xbf16, #tpu.memory_space<vmem>>, %arg8: memref<1x128xf32, #tpu.memory_space<vmem>>, %arg9: memref<8x128xf32, #tpu.memory_space<vmem>>, %arg10: memref<8x512xbf16, #tpu.memory_space<vmem>>) attributes {dimension_semantics = [#tpu.dimension_semantics<parallel>, #tpu.dimension_semantics<arbitrary>], iteration_bounds = array<i64: 1, 7>, scalar_prefetch = 0 : i64, scratch_operands = 1 : i64, tpu.core_type = #tpu.core_type<tc>, window_params = [{transform_indices = @transform_0, window_bounds = array<i64: 8, 2>}, {pipeline_mode = #tpu.pipeline_mode<synchronous>, transform_indices = @transform_1, window_bounds = array<i64: 2, 128>}, {pipeline_mode = #tpu.pipeline_mode<synchronous>, transform_indices = @transform_2, window_bounds = array<i64: 1, 128>}, {pipeline_mode = #tpu.pipeline_mode<synchronous>, transform_indices = @transform_3, window_bounds = array<i64: 128, 512>}, {pipeline_mode = #tpu.pipeline_mode<synchronous>, transform_indices = @transform_4, window_bounds = array<i64: 1, 512>}, {transform_indices = @transform_5, window_bounds = array<i64: 512, 128>}, {transform_indices = @transform_6, window_bounds = array<i64: 1, 128>}, {transform_indices = @transform_7, window_bounds = array<i64: 8, 128>}]} {
    %c0_i32 = arith.constant 0 : i32
    %0 = arith.cmpi eq, %arg1, %c0_i32 : i32
    %1 = arith.extui %0 : i1 to i32
    %c0_i32_0 = arith.constant 0 : i32
    %2 = arith.cmpi ne, %1, %c0_i32_0 : i32
    scf.if %2 {
      %c0_9 = arith.constant 0 : index
      %c0_10 = arith.constant 0 : index
      %15 = vector.load %arg2[%c0_9, %c0_10] : memref<8x2xf32, #tpu.memory_space<vmem>>, vector<8x2xf32>
      %c0_11 = arith.constant 0 : index
      %c0_12 = arith.constant 0 : index
      %16 = vector.load %arg3[%c0_11, %c0_12] : memref<2x128xf32, #tpu.memory_space<vmem>>, vector<2x128xf32>
      %c0_13 = arith.constant 0 : index
      %c0_14 = arith.constant 0 : index
      %17 = vector.load %arg4[%c0_13, %c0_14] : memref<1x128xf32, #tpu.memory_space<vmem>>, vector<1x128xf32>
      %18 = vector.extract_strided_slice %15 {offsets = [0, 0], sizes = [8, 1], strides = [1, 1]} : vector<8x2xf32> to vector<8x1xf32>
      %19 = vector.extract_strided_slice %16 {offsets = [0, 0], sizes = [1, 128], strides = [1, 1]} : vector<2x128xf32> to vector<1x128xf32>
      %20 = vector.broadcast %18 : vector<8x1xf32> to vector<8x128xf32>
      %21 = vector.broadcast %19 : vector<1x128xf32> to vector<8x128xf32>
      %22 = arith.mulf %20, %21 : vector<8x128xf32>
      %23 = vector.broadcast %17 : vector<1x128xf32> to vector<8x128xf32>
      %24 = arith.addf %23, %22 : vector<8x128xf32>
      %25 = vector.extract_strided_slice %15 {offsets = [0, 1], sizes = [8, 1], strides = [1, 1]} : vector<8x2xf32> to vector<8x1xf32>
      %26 = vector.extract_strided_slice %16 {offsets = [1, 0], sizes = [1, 128], strides = [1, 1]} : vector<2x128xf32> to vector<1x128xf32>
      %27 = vector.broadcast %25 : vector<8x1xf32> to vector<8x128xf32>
      %28 = vector.broadcast %26 : vector<1x128xf32> to vector<8x128xf32>
      %29 = arith.mulf %27, %28 : vector<8x128xf32>
      %30 = arith.addf %24, %29 : vector<8x128xf32>
      %cst_15 = arith.constant 0.000000e+00 : f32
      %31 = vector.broadcast %cst_15 : f32 to vector<8x128xf32>
      %32 = arith.maximumf %30, %31 : vector<8x128xf32>
      %c0_16 = arith.constant 0 : index
      %c0_17 = arith.constant 0 : index
      %33 = vector.load %arg5[%c0_16, %c0_17] : memref<128x512xf32, #tpu.memory_space<vmem>>, vector<128x512xf32>
      %cst_18 = arith.constant dense<0.000000e+00> : vector<8x512xf32>
      %34 = tpu.matmul %32, %33, %cst_18 {dimension_numbers = #tpu.dot_dimension_numbers<[1], [0], [0], [1], [0, 0, 1, 1], [], []>} : vector<8x128xf32>, vector<128x512xf32>, vector<8x512xf32> -> vector<8x512xf32>
      %c0_19 = arith.constant 0 : index
      %c0_20 = arith.constant 0 : index
      %35 = vector.load %arg6[%c0_19, %c0_20] : memref<1x512xf32, #tpu.memory_space<vmem>>, vector<1x512xf32>
      %36 = vector.broadcast %35 : vector<1x512xf32> to vector<8x512xf32>
      %37 = arith.addf %34, %36 : vector<8x512xf32>
      %cst_21 = arith.constant 0.000000e+00 : f32
      %38 = vector.broadcast %cst_21 : f32 to vector<8x512xf32>
      %39 = arith.maximumf %37, %38 : vector<8x512xf32>
      %40 = arith.truncf %39 : vector<8x512xf32> to vector<8x512xbf16>
      %c0_22 = arith.constant 0 : index
      %c0_23 = arith.constant 0 : index
      %41 = vector.load %arg10[%c0_22, %c0_23] : memref<8x512xbf16, #tpu.memory_space<vmem>>, vector<8x512xbf16>
      tpu.vector_store %arg10[%c0_22, %c0_23], %40 {strides = array<i32>} : memref<8x512xbf16, #tpu.memory_space<vmem>>, vector<8x512xbf16>,
    } else {
    }
    %c0 = arith.constant 0 : index
    %c0_1 = arith.constant 0 : index
    %3 = vector.load %arg10[%c0, %c0_1] : memref<8x512xbf16, #tpu.memory_space<vmem>>, vector<8x512xbf16>
    %c0_2 = arith.constant 0 : index
    %c0_3 = arith.constant 0 : index
    %4 = vector.load %arg7[%c0_2, %c0_3] : memref<512x128xbf16, #tpu.memory_space<vmem>>, vector<512x128xbf16>
    %cst = arith.constant dense<0.000000e+00> : vector<8x128xf32>
    %5 = tpu.matmul %3, %4, %cst {dimension_numbers = #tpu.dot_dimension_numbers<[1], [0], [0], [1], [0, 0, 1, 1], [], []>} : vector<8x512xbf16>, vector<512x128xbf16>, vector<8x128xf32> -> vector<8x128xf32>
    %c0_4 = arith.constant 0 : index
    %c0_5 = arith.constant 0 : index
    %6 = vector.load %arg8[%c0_4, %c0_5] : memref<1x128xf32, #tpu.memory_space<vmem>>, vector<1x128xf32>
    %7 = vector.broadcast %6 : vector<1x128xf32> to vector<8x128xf32>
    %8 = arith.addf %5, %7 : vector<8x128xf32>
    %9 = arith.negf %8 : vector<8x128xf32>
    %10 = math.exp %9 : vector<8x128xf32>
    %cst_6 = arith.constant 1.000000e+00 : f32
    %11 = vector.broadcast %cst_6 : f32 to vector<8x128xf32>
    %12 = arith.addf %11, %10 : vector<8x128xf32>
    %13 = arith.divf %11, %12 : vector<8x128xf32>
    %c0_7 = arith.constant 0 : index
    %c0_8 = arith.constant 0 : index
    %14 = vector.load %arg9[%c0_7, %c0_8] : memref<8x128xf32, #tpu.memory_space<vmem>>, vector<8x128xf32>
    tpu.vector_store %arg9[%c0_7, %c0_8], %13 {strides = array<i32>} : memref<8x128xf32, #tpu.memory_space<vmem>>, vector<8x128xf32>,
    return
  }
  func.func @transform_0(%arg0: i32, %arg1: i32) -> (i32, i32) {
    %c0_i32 = arith.constant 0 : i32
    %c0_i32_0 = arith.constant 0 : i32
    return %arg0, %c0_i32 : i32, i32
  }
  func.func @transform_1(%arg0: i32, %arg1: i32) -> (i32, i32) {
    %c0_i32 = arith.constant 0 : i32
    %c0_i32_0 = arith.constant 0 : i32
    %c0_i32_1 = arith.constant 0 : i32
    return %c0_i32, %c0_i32_0 : i32, i32
  }
  func.func @transform_2(%arg0: i32, %arg1: i32) -> (i32, i32) {
    %c0_i32 = arith.constant 0 : i32
    %c0_i32_0 = arith.constant 0 : i32
    %c0_i32_1 = arith.constant 0 : i32
    return %c0_i32, %c0_i32_0 : i32, i32
  }
  func.func @transform_3(%arg0: i32, %arg1: i32) -> (i32, i32) {
    %c0_i32 = arith.constant 0 : i32
    %c0_i32_0 = arith.constant 0 : i32
    %c0_i32_1 = arith.constant 0 : i32
    return %c0_i32, %c0_i32_0 : i32, i32
  }
  func.func @transform_4(%arg0: i32, %arg1: i32) -> (i32, i32) {
    %c0_i32 = arith.constant 0 : i32
    %c0_i32_0 = arith.constant 0 : i32
    %c0_i32_1 = arith.constant 0 : i32
    return %c0_i32, %c0_i32_0 : i32, i32
  }
  func.func @transform_5(%arg0: i32, %arg1: i32) -> (i32, i32) {
    %c0_i32 = arith.constant 0 : i32
    %c0_i32_0 = arith.constant 0 : i32
    return %c0_i32, %arg1 : i32, i32
  }
  func.func @transform_6(%arg0: i32, %arg1: i32) -> (i32, i32) {
    %c0_i32 = arith.constant 0 : i32
    %c0_i32_0 = arith.constant 0 : i32
    return %c0_i32, %arg1 : i32, i32
  }
  func.func @transform_7(%arg0: i32, %arg1: i32) -> (i32, i32) {
    %c0_i32 = arith.constant 0 : i32
    return %arg0, %arg1 : i32, i32
  }
}

</mosaic_0001>

<bundles_post_ra>
// kernel: tpu_custom_call.1
= control target key start
LH: loop header
LB: loop body
LE: loop exit
PB: predicated region body
PF: predicated region fallthrough
CT: control target
= control target key end

     0   :  { %12 = vsyncpa [#allocation4], 0  ;;  %s1902_s0 = inlined_call_operand.vmem [shape: f32[8,2], index: 0, kind: input, shape index: {}]   ;;  %s1903_s1 = inlined_call_operand.vmem [shape: f32[2,128], index: 1, kind: input, shape index: {}]   ;;  %s1904_s2 = inlined_call_operand.vmem [shape: f32[1,128], index: 2, kind: input, shape index: {}]   ;;  %s1905_s3 = inlined_call_operand.hbm [shape: f32[128,512], index: 3, kind: input, shape index: {}]   ;;  %s1906_s4 = inlined_call_operand.vmem [shape: f32[1,512], index: 4, kind: input, shape index: {}]   ;;  %s1907_s5 = inlined_call_operand.hbm [shape: bf16[512,896], index: 5, kind: input, shape index: {}]   ;;  %s1908_s6 = inlined_call_operand.vmem [shape: f32[1,896], index: 6, kind: input, shape index: {}]   ;;  %s1909_s7 = inlined_call_operand.hbm [shape: f32[8,896], index: 7, kind: output, shape index: {}]  }
   0x1   :  { %13 = vsyncpa [#allocation7], 0 }
   0x2   :  { %15 = vsyncpa [#allocation7 + $0x1], 0 }
   0x3   :  { %16 = vsyncpa [#allocation5], 0 }
   0x4   :  { %18 = vsyncpa [#allocation5 + $0x1], 0  ;;  %s1628_s24 = smov 0   ;;  %s1630_s25 = smov 0  }
   0x5   :  { %s1632_s26 = smov 0   ;;  %s1634_s27 = smov 0  }
   0x6   :  { %s1636_s28 = smov 0   ;;  %s1638_s29 = smov 0  }
   0x7 LB: > { %1920 = sst [smem:[#allocation12_spill]] %s1555_s24  ;;  %s1140_s30 = sadd.s32 4294967295, %s1575_s29   ;;  %s1575_s29 = sphi %s1638_s29, %s24_s29   ;;  %s1571_s28 = sphi %s1636_s28, %s1944_s28   ;;  %s1567_s27 = sphi %s1634_s27, %s1943_s27   ;;  %s1563_s26 = sphi %s1632_s26, %s1942_s26   ;;  %s1559_s25 = sphi %s1630_s25, %s1941_s25   ;;  %s1555_s24 = sphi %s1628_s24, %s1940_s24  }
   0x8   : > { %1921 = sst [smem:[#allocation13_spill]] %s1575_s29  ;;  %s1141_s8 = sadd.s32 4294967294, %s1575_s29  }
   0x9   : > { %p160_p0 = scmp.ne.s32.totalorder %s1563_s26, %s1559_s25  ;;  %p161_p1 = scmp.eq.s32.totalorder %s1575_s29, 0 }
   0xa   : > { %p166_p2 = scmp.ne.s32.totalorder %s1559_s25, %s1555_s24  ;;  %p1665_p3 = scmp.eq.s32.totalorder %s1140_s30, 0 }
   0xb   : > { %p1669_p4 = por %p161_p1, %p160_p0  ;;  %p218_p5 = scmp.eq.s32.totalorder %s1140_s30, 6 }
   0xc   : > { %s1922_s9 = scalar_select %p1665_p3, 1, 0 }
   0xd   : > { %p1675_p6 = por %p1665_p3, %p166_p2  ;;  %p224_p7 = scmp.eq.s32.totalorder %s1141_s8, 6 }
   0xe   : > { %p1679_p8 = por %p218_p5, %p160_p0  ;;  %p1142_p9 = scmp.ge.s32.totalorder %s1575_s29, 1 }
   0xf   : > { %s1924_s11 = scalar_select %p1675_p6, 1, 0 }
  0x10   : > { %s1925_s12 = scalar_select %p1679_p8, 1, 0 }
  0x11   : > { %p1684_p10 = por %p224_p7, %p166_p2  ;;  %p231_p11 = scmp.lt.s32.totalorder %s1575_s29, 8 }
  0x12   : > { %s1577_s15 = smov [#allocation3]   ;;  %p1329_p0 = scmp.lt.s32.totalorder %s1575_s29, 7 }
  0x13   : > { %s1926_s13 = scalar_select %p1684_p10, 1, 0 }
  0x14   : > { %p1689_p12 = pnand %p1142_p9, %p231_p11  ;;  %s256_s16 = sshll.u32 %s1577_s15, 4  ;;  %s257_s16 = int_to_ptr.vmem [resolvable:$true] %s256_s16 }
  0x15   : > { %1927 = sst [smem:[#allocation14_spill]] %s1926_s13  ;;  %p1704_p2 = pnand %p1329_p0, %p1669_p4 }
  0x16   : > { %s1928_s14 = scalar_select %p1689_p12, 1, 0 }
  0x17   : > { %p1316_p13 = pneg %p1689_p12  ;;  %s33_s19 = sadd.s32 1, %s1571_s28 }
  0x18   : > { %s1930_s18 = scalar_select %p1704_p2, 1, 0 }
  0x19   : > { %p1698_p1 = pnand %p1316_p13, %p1665_p3  ;;  %s1431_s22 = scalar_lea.hbm %s1905_s3, 8192 }
  0x1a   : > { %p1432_p5 = scmp.ne.s32.totalorder %s1905_s3, %s1431_s22  ;;  %p1438_p4 = scmp.lt.u32.totalorder %s1431_s22, %s1905_s3 }
  0x1b   : > { %p1433_p7 = pneg %p1698_p1 }
  0x1d   : > { %p1434_p9 = pnand %p1433_p7, %p1432_p5 }
  0x1f   : > { %p1435_p11 = pneg %p1434_p9 }
  0x21   : > { %p1440_p13 = pnand %p1438_p4, %p1435_p11 }
  0x23   : > { %1443 = shalt.err (!%p1440_p13)
}
  0x24   : > { %s1444_s15 = scalar_lea.vmem %s257_s16, 8192  ;;  %p1452_p6 = scmp.lt.s32.totalorder %s257_s16, %s257_s16 }
  0x25   : > { %p1445_p0 = scmp.ne.s32.totalorder %s257_s16, %s1444_s15  ;;  %p1453_p3 = scmp.lt.s32.totalorder %s1444_s15, %s1444_s15 }
  0x27   : > { %p1447_p10 = pnand %p1445_p0, %p1433_p7  ;;  %p1454_p12 = por %p1453_p3, %p1452_p6 }
  0x29   : > { %p1448_p8 = pneg %p1447_p10 }
  0x2b   : > { %p1455_p2 = pnand %p1454_p12, %p1448_p8 }
  0x2d   : > { %1458 = shalt.err (!%p1455_p2)
}
  0x2e   : > { %s1578_s20 = smov 512   ;;  %s1579_s21 = smov 32  }
  0x2f   : > { %1319 = dma.hbm_to_vmem [thread:$0]  (!%p1698_p1), %s1905_s3, 8192, %s257_s16, [#allocation4], %s1578_s20, %s1578_s20, %s1579_s21  }
  0x30   : > { %p34_p5 = scmp.ge.s32.totalorder %s33_s19, 7  ;;  %s153_s30 = sadd.s32 1, %s1563_s26 }
  0x31   : > { %s273_s8 = sand.u32 1, %s1563_s26   ;;  %s1147_s13 = sshll.u32 %s1571_s28, 6 }
  0x32   : > { %s1946_s19 = smov (%p34_p5, %s33_s19), 0  ;;  %s1146_s10 = sshll.u32 %s273_s8, 8 }
  0x33   : > { %s150_s15 = ssub.s32 %s1571_s28, %s1946_s19  ;;  %s1735_s17 = scalar_lea.hbm %s1907_s5, %s1147_s13 }
  0x34   : > { %p151_p3 = scmp.eq.s32.totalorder %s150_s15, 0  ;;  %s277_s16 = scalar_lea.vmem [#allocation6], %s1146_s10 }
  0x35   : > { %s283_s20 = sshll.u32 %s277_s16, 4  ;;  %s1742_s22 = scalar_lea.sflag [#allocation7], %s273_s8  ;;  %s1740_s20 = int_to_ptr.vmem [resolvable:$true] %s283_s20 }
  0x36   : > { %s1738_s21 = scalar_select %p151_p3, %s1563_s26, %s153_s30  }
  0x37   : > { %s1459_s23 = scalar_lea.hbm %s1735_s17, 4096  ;;  %p1931_p8 = scmp.ne.s32.totalorder %s1930_s18, 0 }
  0x38   : > { %p1460_p6 = scmp.ne.s32.totalorder %s1735_s17, %s1459_s23  ;;  %s1464_s13 = scalar_lea.hbm %s1907_s5, 28672 }
  0x39   : > { %p1461_p10 = pneg %p1931_p8  ;;  %p1465_p2 = scmp.lt.u32.totalorder %s1735_s17, %s1907_s5 }
  0x3a   : > { %p1466_p7 = scmp.lt.u32.totalorder %s1464_s13, %s1459_s23  ;;  %p1468_p11 = scmp.lt.u32.totalorder %s1459_s23, %s1735_s17 }
  0x3b   : > { %p1462_p12 = pnand %p1461_p10, %p1460_p6 }
  0x3c   : > { %p1467_p9 = por %p1466_p7, %p1465_p2 }
  0x3d   : > { %p1463_p1 = pneg %p1462_p12 }
  0x3e   : > { %p1469_p4 = por %p1468_p11, %p1467_p9 }
  0x40   : > { %p1470_p13 = pnand %p1469_p4, %p1463_p1 }
  0x42   : > { %1473 = shalt.err (!%p1470_p13)
}
  0x43   : > { %s1474_s30 = scalar_lea.vmem %s1740_s20, 4096  ;;  %s1580_s8 = smov [#allocation6]  }
  0x44   : > { %p1475_p0 = scmp.ne.s32.totalorder %s1740_s20, %s1474_s30  ;;  %s1479_s16 = sshll.u32 %s1580_s8, 4  ;;  %s1480_s16 = int_to_ptr.vmem [resolvable:$false] %s1479_s16 }
  0x45   : > { %s1481_s24 = scalar_lea.vmem %s1480_s16, 8192  ;;  %p1482_p6 = scmp.lt.s32.totalorder %s1740_s20, %s1480_s16 }
  0x46   : > { %p1477_p5 = pnand %p1475_p0, %p1461_p10  ;;  %p1483_p12 = scmp.lt.s32.totalorder %s1481_s24, %s1474_s30 }
  0x48   : > { %p1478_p3 = pneg %p1477_p5  ;;  %p1484_p2 = por %p1483_p12, %p1482_p6 }
  0x4a   : > { %p1485_p7 = pnand %p1484_p2, %p1478_p3 }
  0x4c   : > { %1488 = shalt.err (!%p1485_p7)
}
  0x4d   : > { %s1581_s23 = smov 448   ;;  %s1582_s29 = smov 64  }
  0x4e   : > { %s1583_s13 = smov 4   ;;  %p1932_p10 = scmp.ne.s32.totalorder %s1928_s14, 0 }
  0x4f   : > { %1323 = dma.hbm_to_vmem [thread:$0]  (!%p1931_p8), %s1735_s17, 4096, %s1740_s20, %s1742_s22, %s1581_s23, %s1582_s29, %s1583_s13  }
  0x50   : > { %301 = sbr.rel (%p1932_p10) target bundleno = 750 (0x2ee), region = 48  ;;  %p1933_p1 = scmp.ne.s32.totalorder (!%p1932_p10), %s1922_s9, 0 }
  0x57   : > { %1542 = dma.done.wait (%p1933_p1), [#allocation4], 8192  }
  0x58   : > { %1544 = vsyncadd (%p1933_p1), [#allocation4], 4294959104  ;;  %s1777_s10 = sand.u32 1, %s1559_s25   ;;  %p1934_p8 = scmp.ne.s32.totalorder %s1924_s11, 0 }
  0x59   : > { %s1150_s15 = sshll.u32 %s1777_s10, 8  ;;  %s308_s30 = scalar_lea.sflag [#allocation7], %s1777_s10 }
  0x5a   : > { %s1781_s8 = scalar_lea.vmem [#allocation6], %s1150_s15 }
  0x5b   : > { %1546 = dma.done.wait (%p1934_p8), %s308_s30, 4096  }
  0x5c   : > { %1548 = vsyncadd (%p1934_p8), %s308_s30, 4294963200  ;;  %s1151_s9 = sshll.u32 %s1777_s10, 3  ;;  %p353_p9 = scmp.lt.s32.totalorder %s1567_s27, 6 }
  0x5d   : > { %s1796_s22 = scalar_lea.vmem [#allocation8], %s1151_s9  ;;  %p1152_p11 = scmp.ne.s32.totalorder %s1567_s27, 0 }
  0x5e   : > { %s1790_s14 = scalar_select %p353_p9, %s1567_s27, 6 }
  0x5f   : > { %360 = sbr.rel (%p1152_p11) target bundleno = 457 (0x1c9), region = 60  ;;  %v361_v0 = vld [vmem:[%s1902_s0] sm:$0xff] (!%p1152_p11)  ;;  %v1584_v3 = vmov (!%p1152_p11), 0   ;;  %v395_v5 = vld [vmem:[#allocation3 + $0x18] sm:$0xff] (!%p1152_p11)  ;;  %v392_v7 = vld [vmem:[#allocation3] sm:$0xff] (!%p1152_p11)  ;;  %v1585_v26 = vmov (!%p1152_p11), 1  }
  0x60   : > { %s355_s20 = scalar_lea.vmem %s1908_s6, %s1790_s14  ;;  %v393_v1 = vld [vmem:[#allocation3 + $0x8] sm:$0xff] (!%p1152_p11)  ;;  %1389 = vset.pattern.permute.xlu0 (!%p1152_p11), %v1584_v3  ;;  %v399_v6 = vld [vmem:[#allocation3 + $0x38] sm:$0xff] (!%p1152_p11)  ;;  %v396_v9 = vld [vmem:[#allocation3 + $0x20] sm:$0xff] (!%p1152_p11)  ;;  %v1586_v53 = vmov (!%p1152_p11), 0.0  }
  0x61   : > { %v397_v2 = vld [vmem:[#allocation3 + $0x28] sm:$0xff] (!%p1152_p11)  ;;  %366 = vperm.xlu0 (!%p1152_p11), %1389, %v361_v0   ;;  %v1276_v8 = vpack.c.bf16 (!%p1152_p11), %v399_v6, %v395_v5  ;;  %v394_v10 = vld [vmem:[#allocation3 + $0x10] sm:$0xff] (!%p1152_p11)  ;;  %v1246_v12 = vpack.c.bf16 (!%p1152_p11), %v396_v9, %v392_v7  ;;  %v403_v16 = vld [vmem:[#allocation3 + $0x58] sm:$0xff] (!%p1152_p11)  ;;  %542 = vmatprep.mubr.f32.mxu0 (!%p1152_p11), %v1586_v53 }
  0x62   : > { %v1244_v4 = vpack.c.bf16 (!%p1152_p11), %v397_v2, %v393_v1  ;;  %v398_v11 = vld [vmem:[#allocation3 + $0x30] sm:$0xff] (!%p1152_p11)  ;;  %v401_v14 = vld [vmem:[#allocation3 + $0x48] sm:$0xff] (!%p1152_p11)  ;;  %v407_v18 = vld [vmem:[#allocation3 + $0x78] sm:$0xff] (!%p1152_p11)  ;;  %613 = vmatprep.mubr.f32.mxu1 (!%p1152_p11), %v1586_v53 }
  0x63   : > { %v1278_v13 = vpack.c.bf16 (!%p1152_p11), %v398_v11, %v394_v10  ;;  %v405_v15 = vld [vmem:[#allocation3 + $0x68] sm:$0xff] (!%p1152_p11)  ;;  %1277 = vmatprep.subr.bf16.mxu1 (!%p1152_p11), %v1276_v8  ;;  %v400_v19 = vld [vmem:[#allocation3 + $0x40] sm:$0xff] (!%p1152_p11)  ;;  %v1280_v21 = vpack.c.bf16 (!%p1152_p11), %v407_v18, %v403_v16  ;;  %v402_v23 = vld [vmem:[#allocation3 + $0x50] sm:$0xff] (!%p1152_p11) }
  0x64   : > { %1245 = vmatprep.subr.bf16.mxu0 (!%p1152_p11), %v1244_v4  ;;  %v1248_v17 = vpack.c.bf16 (!%p1152_p11), %v405_v15, %v401_v14  ;;  %v404_v20 = vld [vmem:[#allocation3 + $0x60] sm:$0xff] (!%p1152_p11)  ;;  %v406_v24 = vld [vmem:[#allocation3 + $0x70] sm:$0xff] (!%p1152_p11)  ;;  %v409_v25 = vld [vmem:[#allocation3 + $0x88] sm:$0xff] (!%p1152_p11) }
  0x65   : > { %1247 = vmatpush1.bf16.msra.mxu0 (!%p1152_p11), %v1246_v12  ;;  %1279 = vmatpush1.bf16.msra.mxu1 (!%p1152_p11), %v1278_v13  ;;  %v1250_v22 = vpack.c.bf16 (!%p1152_p11), %v404_v20, %v400_v19  ;;  %v1282_v27 = vpack.c.bf16 (!%p1152_p11), %v406_v24, %v402_v23  ;;  %v413_v28 = vld [vmem:[#allocation3 + $0xa8] sm:$0xff] (!%p1152_p11)  ;;  %v411_v29 = vld [vmem:[#allocation3 + $0x98] sm:$0xff] (!%p1152_p11)  ;;  %v408_v33 = vld [vmem:[#allocation3 + $0x80] sm:$0xff] (!%p1152_p11) }
  0x66   : > { %1390 = vset.pattern.permute.xlu0 %v1585_v26  ;;  %1249 = vmatprep.subr.bf16.mxu0 %v1248_v17  ;;  %v415_v30 = vld [vmem:[#allocation3 + $0xb8] sm:$0xff]  ;;  %v1252_v31 = vpack.c.bf16 %v413_v28, %v409_v25  ;;  %v412_v34 = vld [vmem:[#allocation3 + $0xa0] sm:$0xff]  ;;  %v410_v35 = vld [vmem:[#allocation3 + $0x90] sm:$0xff] }
  0x67   : > { %382 = vperm.xlu0 %1390, %v361_v0   ;;  %1281 = vmatprep.subr.bf16.mxu1 %v1280_v21  ;;  %v1284_v32 = vpack.c.bf16 %v415_v30, %v411_v29  ;;  %v414_v36 = vld [vmem:[#allocation3 + $0xb0] sm:$0xff]  ;;  %v417_v37 = vld [vmem:[#allocation3 + $0xc8] sm:$0xff]  ;;  %v1254_v39 = vpack.c.bf16 %v412_v34, %v408_v33  ;;  %v419_v41 = vld [vmem:[#allocation3 + $0xd8] sm:$0xff] }
  0x68   : > { %v421_v38 = vld [vmem:[#allocation3 + $0xe8] sm:$0xff]  ;;  %v1286_v40 = vpack.c.bf16 %v414_v36, %v410_v35  ;;  %v423_v42 = vld [vmem:[#allocation3 + $0xf8] sm:$0xff]  ;;  %v416_v43 = vld [vmem:[#allocation3 + $0xc0] sm:$0xff]  ;;  %v369_v36 = vlaneseq }
  0x69   : > { %1251 = vmatpush1.bf16.msra.mxu0 %v1250_v22  ;;  %1283 = vmatpush1.bf16.msra.mxu1 %v1282_v27  ;;  %v1256_v44 = vpack.c.bf16 %v421_v38, %v417_v37  ;;  %v1288_v45 = vpack.c.bf16 %v423_v42, %v419_v41  ;;  %v420_v46 = vld [vmem:[#allocation3 + $0xe0] sm:$0xff]  ;;  %v418_v47 = vld [vmem:[#allocation3 + $0xd0] sm:$0xff]  ;;  %v425_v49 = vld [vmem:[#allocation3 + $0x108] sm:$0xff] }
  0x6a   : > { %1253 = vmatprep.subr.bf16.mxu0 %v1252_v31  ;;  %1285 = vmatprep.subr.bf16.mxu1 %v1284_v32  ;;  %v422_v48 = vld [vmem:[#allocation3 + $0xf0] sm:$0xff]  ;;  %v429_v50 = vld [vmem:[#allocation3 + $0x128] sm:$0xff]  ;;  %v427_v51 = vld [vmem:[#allocation3 + $0x118] sm:$0xff]  ;;  %v1258_v54 = vpack.c.bf16 %v420_v46, %v416_v43  ;;  %v370_v37 = vshrl.u32 %v369_v36, 7 }
  0x6b   : > { %v431_v52 = vld [vmem:[#allocation3 + $0x138] sm:$0xff]  ;;  %v1290_v55 = vpack.c.bf16 %v422_v48, %v418_v47  ;;  %v424_v56 = vld [vmem:[#allocation3 + $0x100] sm:$0xff]  ;;  %v1260_v58 = vpack.c.bf16 %v429_v50, %v425_v49  ;;  %v426_v60 = vld [vmem:[#allocation3 + $0x110] sm:$0xff] }
  0x6c   : > { %v428_v57 = vld [vmem:[#allocation3 + $0x120] sm:$0xff]  ;;  %v1292_v59 = vpack.c.bf16 %v431_v52, %v427_v51  ;;  %v430_v61 = vld [vmem:[#allocation3 + $0x130] sm:$0xff]  ;;  %v433_v62 = vld [vmem:[#allocation3 + $0x148] sm:$0xff]  ;;  %v371_v38 = vsub.s32 0, %v370_v37  ;;  %v387_v41 = vsub.s32 1, %v370_v37  ;;  %v468_v51 = vsub.s32 2, %v370_v37 }
  0x6d   : > { %1255 = vmatpush1.bf16.msra.mxu0 %v1254_v39  ;;  %1287 = vmatpush1.bf16.msra.mxu1 %v1286_v40  ;;  %v437_v63 = vld [vmem:[#allocation3 + $0x168] sm:$0xff]  ;;  %v435_v0 = vld [vmem:[#allocation3 + $0x158] sm:$0xff]  ;;  %v1262_v2 = vpack.c.bf16 %v428_v57, %v424_v56  ;;  %v1294_v3 = vpack.c.bf16 %v430_v61, %v426_v60  ;;  %v432_v4 = vld [vmem:[#allocation3 + $0x140] sm:$0xff]  ;;  %v472_v53 = vsub.s32 3, %v370_v37 }
  0x6e   : > { %1257 = vmatprep.subr.bf16.mxu0 %v1256_v44  ;;  %1289 = vmatprep.subr.bf16.mxu1 %v1288_v45  ;;  %v439_v1 = vld [vmem:[#allocation3 + $0x178] sm:$0xff]  ;;  %v436_v5 = vld [vmem:[#allocation3 + $0x160] sm:$0xff]  ;;  %v1264_v6 = vpack.c.bf16 %v437_v63, %v433_v62  ;;  %v434_v8 = vld [vmem:[#allocation3 + $0x150] sm:$0xff] }
  0x6f   : > { %v1296_v7 = vpack.c.bf16 %v439_v1, %v435_v0  ;;  %v438_v9 = vld [vmem:[#allocation3 + $0x170] sm:$0xff]  ;;  %v441_v10 = vld [vmem:[#allocation3 + $0x188] sm:$0xff]  ;;  %v443_v12 = vld [vmem:[#allocation3 + $0x198] sm:$0xff]  ;;  %v1266_v14 = vpack.c.bf16 %v436_v5, %v432_v4 }
  0x70   : > { %v445_v11 = vld [vmem:[#allocation3 + $0x1a8] sm:$0xff]  ;;  %v447_v13 = vld [vmem:[#allocation3 + $0x1b8] sm:$0xff]  ;;  %v1298_v15 = vpack.c.bf16 %v438_v9, %v434_v8  ;;  %v440_v16 = vld [vmem:[#allocation3 + $0x180] sm:$0xff] }
  0x71   : > { %1259 = vmatpush1.bf16.msra.mxu0 %v1258_v54  ;;  %1291 = vmatpush1.bf16.msra.mxu1 %v1290_v55  ;;  %v444_v17 = vld [vmem:[#allocation3 + $0x1a0] sm:$0xff]  ;;  %v1268_v18 = vpack.c.bf16 %v445_v11, %v441_v10  ;;  %v1300_v19 = vpack.c.bf16 %v447_v13, %v443_v12  ;;  %v442_v20 = vld [vmem:[#allocation3 + $0x190] sm:$0xff]  ;;  %v449_v22 = vld [vmem:[#allocation3 + $0x1c8] sm:$0xff] }
  0x72   : > { %1261 = vmatprep.subr.bf16.mxu0 %v1260_v58  ;;  %1293 = vmatprep.subr.bf16.mxu1 %v1292_v59  ;;  %v446_v21 = vld [vmem:[#allocation3 + $0x1b0] sm:$0xff]  ;;  %v453_v23 = vld [vmem:[#allocation3 + $0x1e8] sm:$0xff]  ;;  %v451_v24 = vld [vmem:[#allocation3 + $0x1d8] sm:$0xff]  ;;  %v1270_v26 = vpack.c.bf16 %v444_v17, %v440_v16 }
  0x73   : > { %v455_v25 = vld [vmem:[#allocation3 + $0x1f8] sm:$0xff]  ;;  %v1302_v27 = vpack.c.bf16 %v446_v21, %v442_v20  ;;  %v448_v28 = vld [vmem:[#allocation3 + $0x1c0] sm:$0xff]  ;;  %v1272_v29 = vpack.c.bf16 %v453_v23, %v449_v22  ;;  %v450_v32 = vld [vmem:[#allocation3 + $0x1d0] sm:$0xff] }
  0x74   : > { %v1304_v30 = vpack.c.bf16 %v455_v25, %v451_v24  ;;  %v452_v31 = vld [vmem:[#allocation3 + $0x1e0] sm:$0xff]  ;;  %v454_v33 = vld [vmem:[#allocation3 + $0x1f0] sm:$0xff]  ;;  %v362_v39 = vld [vmem:[%s1903_s1] sm:$0x3] }
  0x75   : > { %1263 = vmatpush1.bf16.msra.mxu0 %v1262_v2  ;;  %1295 = vmatpush1.bf16.msra.mxu1 %v1294_v3  ;;  %v1274_v34 = vpack.c.bf16 %v452_v31, %v448_v28  ;;  %v1306_v35 = vpack.c.bf16 %v454_v33, %v450_v32  ;;  %v372_v40 = vrot.slane %v362_v39, %v371_v38  ;;  %v1153_v45 = vld [vmem:[%s1904_s2] ss:$0 sm:$0xff] }
  0x76   : > { %1265 = vmatprep.subr.bf16.mxu0 %v1264_v6  ;;  %1297 = vmatprep.subr.bf16.mxu1 %v1296_v7  ;;  %v388_v44 = vrot.slane %v362_v39, %v387_v41  ;;  %v456_v52 = vld [vmem:[%s1906_s4] sm:$0xf] }
  0x77   : > { %v461_v54 = vrot.slane %v456_v52, %v371_v38  ;;  %v469_v55 = vrot.slane %v456_v52, %v468_v51  ;;  %v465_v56 = vrot.slane %v456_v52, %v387_v41  ;;  %v473_v57 = vrot.slane %v456_v52, %v472_v53 }
  0x79   : > { %1267 = vmatpush1.bf16.msra.mxu0 %v1266_v14  ;;  %1299 = vmatpush1.bf16.msra.mxu1 %v1298_v15 }
  0x7a   : > { %1269 = vmatprep.subr.bf16.mxu0 %v1268_v18  ;;  %1301 = vmatprep.subr.bf16.mxu1 %v1300_v19 }
  0x7d   : > { %1271 = vmatpush1.bf16.msra.mxu0 %v1270_v26  ;;  %1303 = vmatpush1.bf16.msra.mxu1 %v1302_v27 }
  0x7e   : > { %1273 = vmatprep.subr.bf16.mxu0 %v1272_v29  ;;  %1305 = vmatprep.subr.bf16.mxu1 %v1304_v30 }
  0x81   : > { %1275 = vmatpush1.bf16.msra.mxu0 %v1274_v34  ;;  %1307 = vmatpush1.bf16.msra.mxu1 %v1306_v35 }
  0xe0   : > { %v367_v42 = vpop.permute.xlu0 %366 }
  0xe1   : > { %v373_v43 = vmul.f32 %v372_v40, %v367_v42 }
  0xe3   : > { %v380_v47 = vadd.f32 %v1153_v45, %v373_v43 }
  0xe6   : > { %v383_v46 = vpop.permute.xlu0 %382 }
  0xe7   : > { %v389_v48 = vmul.f32 %v388_v44, %v383_v46 }
  0xe9   : > { %v390_v49 = vadd.f32 %v389_v48, %v380_v47 }
  0xeb   : > { %v391_v50 = vmax.f32 %v390_v49, 0.0 }
  0xed   : > { %543 = vmatmul.mubr.f32.vlgmr.msra.gmra.mrb[0].mxu0 %v391_v50  ;;  %614 = vmatmul.mubr.f32.vlgmr.msra.gmra.mrb[0].mxu1 %v391_v50 }
 0x1c0   : > { %v544_v58 = vpop.f32.mrb[0].mxu0  ;;  %v615_v59 = vpop.f32.mrb[0].mxu1 }
 0x1c1   : > { %v545_v60 = vadd.f32 %v544_v58, %v461_v54  ;;  %v616_v61 = vadd.f32 %v615_v59, %v469_v55  ;;  %v546_v62 = vpop.f32.mrb[1].mxu0  ;;  %v617_v63 = vpop.f32.mrb[1].mxu1 }
 0x1c2   : > { %v547_v0 = vadd.f32 %v546_v62, %v465_v56  ;;  %v618_v1 = vadd.f32 %v617_v63, %v473_v57 }
 0x1c3   : > { %v620_v2 = vmax.f32 %v545_v60, 0.0  ;;  %v622_v3 = vmax.f32 %v616_v61, 0.0 }
 0x1c4   : > { %v621_v4 = vmax.f32 %v547_v0, 0.0  ;;  %v623_v5 = vmax.f32 %v618_v1, 0.0 }
 0x1c6   : > { %v1198_v6 = vpack.c.bf16 %v621_v4, %v620_v2  ;;  %v1199_v7 = vpack.c.bf16 %v623_v5, %v622_v3 }
 0x1c8   : > { %640 = vst [vmem:[#allocation2] sm:$0xff] %v1198_v6  ;;  %641 = vst [vmem:[#allocation2 + $0x8] sm:$0xff] %v1199_v7 }
 0x1c9 PF: > { %v1391_v8 = vld [vmem:[%s1781_s8 + $0x40] sm:$0xff]   ;;  %v1395_v12 = vld [vmem:[%s1781_s8 + $0x48] sm:$0xff]   ;;  %v1399_v16 = vld [vmem:[%s1781_s8 + $0x50] sm:$0xff]   ;;  %s1024_s14 = sshll.u32 %s1796_s22, 4  ;;  %s1009_s11 = scalar_lea.sflag [#allocation5], %s1777_s10  ;;  %s1855_s14 = int_to_ptr.vmem [resolvable:$true] %s1024_s14 }
 0x1ca   : > { %v1392_v9 = vld [vmem:[%s1781_s8 + $0xc0] sm:$0xff]   ;;  %1200 = vmatprep.subr.bf16.mxu0 %v1391_v8  ;;  %v1396_v13 = vld [vmem:[%s1781_s8 + $0xc8] sm:$0xff]   ;;  %v1400_v17 = vld [vmem:[%s1781_s8 + $0xd0] sm:$0xff]   ;;  %s1489_s24 = scalar_lea.vmem %s1855_s14, 128  ;;  %p1935_p13 = scmp.ne.s32.totalorder %s1925_s12, 0 }
 0x1cb   : > { %v1393_v10 = vld [vmem:[%s1781_s8] sm:$0xff]   ;;  %1222 = vmatprep.subr.bf16.mxu1 %v1392_v9  ;;  %v1397_v14 = vld [vmem:[%s1781_s8 + $0x8] sm:$0xff]   ;;  %v1401_v18 = vld [vmem:[%s1781_s8 + $0x10] sm:$0xff]   ;;  %p1490_p4 = scmp.ne.s32.totalorder %s1855_s14, %s1489_s24 }
 0x1cc   : > { %v1394_v11 = vld [vmem:[%s1781_s8 + $0x80] sm:$0xff]   ;;  %1201 = vmatpush3.bf16.msra.mxu0 %v1393_v10  ;;  %v1398_v15 = vld [vmem:[%s1781_s8 + $0x88] sm:$0xff]   ;;  %v1402_v19 = vld [vmem:[%s1781_s8 + $0x90] sm:$0xff]  }
 0x1cd   : > { %1223 = vmatpush3.bf16.msra.mxu1 %v1394_v11  ;;  %1202 = vmatprep.subr.bf16.mxu0 %v1395_v12  ;;  %v1403_v20 = vld [vmem:[%s1781_s8 + $0x58] sm:$0xff]   ;;  %v1407_v24 = vld [vmem:[%s1781_s8 + $0x60] sm:$0xff]   ;;  %v1411_v28 = vld [vmem:[%s1781_s8 + $0x68] sm:$0xff]   ;;  %p1491_p0 = pnand %p1490_p4, %p1935_p13 }
 0x1ce   : > { %1224 = vmatprep.subr.bf16.mxu1 %v1396_v13  ;;  %v1404_v21 = vld [vmem:[%s1781_s8 + $0xd8] sm:$0xff]   ;;  %v1408_v25 = vld [vmem:[%s1781_s8 + $0xe0] sm:$0xff]   ;;  %v1412_v29 = vld [vmem:[%s1781_s8 + $0xe8] sm:$0xff]  }
 0x1cf   : > { %v1405_v22 = vld [vmem:[%s1781_s8 + $0x18] sm:$0xff]   ;;  %v1409_v26 = vld [vmem:[%s1781_s8 + $0x20] sm:$0xff]   ;;  %v1413_v30 = vld [vmem:[%s1781_s8 + $0x28] sm:$0xff]   ;;  %p1492_p5 = pneg %p1491_p0 }
 0x1d0   : > { %1203 = vmatpush3.bf16.msra.mxu0 %v1397_v14  ;;  %v1406_v23 = vld [vmem:[%s1781_s8 + $0x98] sm:$0xff]   ;;  %v1410_v27 = vld [vmem:[%s1781_s8 + $0xa0] sm:$0xff]   ;;  %v1414_v31 = vld [vmem:[%s1781_s8 + $0xa8] sm:$0xff]  }
 0x1d1   : > { %1225 = vmatpush3.bf16.msra.mxu1 %v1398_v15  ;;  %1204 = vmatprep.subr.bf16.mxu0 %v1399_v16  ;;  %v1415_v32 = vld [vmem:[%s1781_s8 + $0x70] sm:$0xff]   ;;  %v1419_v36 = vld [vmem:[%s1781_s8 + $0x78] sm:$0xff]   ;;  %v1156_v48 = vld [vmem:[%s355_s20] ss:$0 sm:$0xff] }
 0x1d2   : > { %1226 = vmatprep.subr.bf16.mxu1 %v1400_v17  ;;  %v1416_v33 = vld [vmem:[%s1781_s8 + $0xf0] sm:$0xff]   ;;  %v1420_v37 = vld [vmem:[%s1781_s8 + $0xf8] sm:$0xff]  }
 0x1d3   : > { %v1417_v34 = vld [vmem:[%s1781_s8 + $0x30] sm:$0xff]   ;;  %v1421_v38 = vld [vmem:[%s1781_s8 + $0x38] sm:$0xff]  }
 0x1d4   : > { %1205 = vmatpush3.bf16.msra.mxu0 %v1401_v18  ;;  %v1418_v35 = vld [vmem:[%s1781_s8 + $0xb0] sm:$0xff]   ;;  %v1422_v39 = vld [vmem:[%s1781_s8 + $0xb8] sm:$0xff]   ;;  %s1195_s8 = sshll.u32 %s1567_s27, 7  ;;  %s1587_s27 = smov [#allocation8]  }
 0x1d5   : > { %1227 = vmatpush3.bf16.msra.mxu1 %v1402_v19  ;;  %1206 = vmatprep.subr.bf16.mxu0 %v1403_v20  ;;  %v642_v40 = vld [vmem:[#allocation2] sm:$0xff]  ;;  %v643_v41 = vld [vmem:[#allocation2 + $0x8] sm:$0xff]  ;;  %s1853_s16 = scalar_lea.hbm %s1909_s7, %s1195_s8  ;;  %s1493_s23 = sshll.u32 %s1587_s27, 4  ;;  %s1494_s23 = int_to_ptr.vmem [resolvable:$false] %s1493_s23 }
 0x1d6   : > { %1228 = vmatprep.subr.bf16.mxu1 %v1404_v21  ;;  %v1157_v42 = vcombine.low %v642_v40, %v642_v40  ;;  %v1158_v43 = vcombine.high %v642_v40, %v642_v40  ;;  %v1159_v44 = vcombine.low %v643_v41, %v643_v41  ;;  %v1160_v45 = vcombine.high %v643_v41, %v643_v41  ;;  %s1495_s29 = scalar_lea.vmem %s1494_s23, 256  ;;  %p1496_p3 = scmp.lt.s32.totalorder %s1855_s14, %s1494_s23 }
 0x1d7   : > { %p1497_p6 = scmp.lt.s32.totalorder %s1495_s29, %s1489_s24 }
 0x1d8   : > { %1207 = vmatpush3.bf16.msra.mxu0 %v1405_v22  ;;  %953 = vmatprep.mubr.bf16.mxu0 %v1158_v43 }
 0x1d9   : > { %1229 = vmatpush3.bf16.msra.mxu1 %v1406_v23  ;;  %1208 = vmatprep.subr.bf16.mxu0 %v1407_v24  ;;  %p1498_p12 = por %p1497_p6, %p1496_p3 }
 0x1da   : > { %1230 = vmatprep.subr.bf16.mxu1 %v1408_v25  ;;  %993 = vmatprep.mubr.bf16.mxu1 %v1160_v45 }
 0x1db   : > { %p1499_p2 = pnand %p1498_p12, %p1492_p5 }
 0x1dc   : > { %1209 = vmatpush3.bf16.msra.mxu0 %v1409_v26 }
 0x1dd   : > { %1231 = vmatpush3.bf16.msra.mxu1 %v1410_v27  ;;  %1210 = vmatprep.subr.bf16.mxu0 %v1411_v28 }
 0x1de   : > { %1232 = vmatprep.subr.bf16.mxu1 %v1412_v29 }
 0x1e0   : > { %1211 = vmatpush3.bf16.msra.mxu0 %v1413_v30 }
 0x1e1   : > { %1233 = vmatpush3.bf16.msra.mxu1 %v1414_v31  ;;  %1212 = vmatprep.subr.bf16.mxu0 %v1415_v32 }
 0x1e2   : > { %1234 = vmatprep.subr.bf16.mxu1 %v1416_v33 }
 0x1e4   : > { %1213 = vmatpush3.bf16.msra.mxu0 %v1417_v34 }
 0x1e5   : > { %1235 = vmatpush3.bf16.msra.mxu1 %v1418_v35  ;;  %1214 = vmatprep.subr.bf16.mxu0 %v1419_v36 }
 0x1e6   : > { %1236 = vmatprep.subr.bf16.mxu1 %v1420_v37 }
 0x1e8   : > { %1215 = vmatpush3.bf16.msra.mxu0 %v1421_v38 }
 0x1e9   : > { %1237 = vmatpush3.bf16.msra.mxu1 %v1422_v39 }
 0x1eb   : > { %954 = vmatmul.mubr.bf16.vlgmr.msra.gmra.mrb[0].mxu0 %v1157_v42 }
 0x1ec   : > { %994 = vmatmul.mubr.bf16.vlgmr.msra.gmra.mrb[0].mxu1 %v1159_v44 }
 0x2be   : > { %v1216_v46 = vpop.f32.mrb[0].mxu0 }
 0x2bf   : > { %v1238_v47 = vpop.f32.mrb[0].mxu1  ;;  %v1217_v49 = vpop.f32.mrb[1].mxu0 }
 0x2c0   : > { %v1239_v50 = vpop.f32.mrb[1].mxu1  ;;  %v1218_v51 = vadd.f32 %v1217_v49, %v1216_v46  ;;  %v1219_v53 = vpop.f32.mrb[2].mxu0 }
 0x2c1   : > { %v1240_v52 = vadd.f32 %v1239_v50, %v1238_v47  ;;  %v1241_v54 = vpop.f32.mrb[2].mxu1  ;;  %v1220_v55 = vpop.f32.mrb[3].mxu0 }
 0x2c2   : > { %v1242_v56 = vpop.f32.mrb[3].mxu1  ;;  %v956_v57 = vadd.f32 %v1218_v51, %v1156_v48 }
 0x2c4   : > { %v996_v58 = vadd.f32 %v1240_v52, %v956_v57 }
 0x2c6   : > { %v1193_v59 = vmul.f32 -1.442695, %v996_v58 }
 0x2c8   : > { %1427 = vpow2.f32 %v1193_v59 }
 0x2d2   : > { %v1428_v60 = vpop.eup %1427 }
 0x2d3   : > { %v1004_v61 = vadd.f32 1.0, %v1428_v60 }
 0x2d5   : > { %1429 = vrcp.f32 %v1004_v61 }
 0x2df   : > { %v1430_v62 = vpop.eup %1429 }
 0x2e0   : > { %1007 = vst [vmem:[%s1796_s22] sm:$0xff] %v1430_v62 }
 0x2e1   : > { %1502 = shalt.err (!%p1499_p2)
}
 0x2e2   : > { %s1503_s10 = scalar_lea.hbm %s1853_s16, 128  ;;  %s1507_s15 = scalar_lea.hbm %s1909_s7, 896 }
 0x2e3   : > { %p1504_p7 = scmp.ne.s32.totalorder %s1853_s16, %s1503_s10  ;;  %p1508_p8 = scmp.lt.u32.totalorder %s1853_s16, %s1909_s7 }
 0x2e4   : > { %p1509_p9 = scmp.lt.u32.totalorder %s1507_s15, %s1503_s10  ;;  %p1511_p4 = scmp.lt.u32.totalorder %s1503_s10, %s1853_s16 }
 0x2e5   : > { %p1505_p10 = pnand %p1504_p7, %p1935_p13 }
 0x2e6   : > { %p1510_p11 = por %p1509_p9, %p1508_p8 }
 0x2e7   : > { %p1506_p1 = pneg %p1505_p10 }
 0x2e8   : > { %p1512_p0 = por %p1511_p4, %p1510_p11 }
 0x2ea   : > { %p1513_p5 = pnand %p1512_p0, %p1506_p1 }
 0x2ec   : > { %1516 = shalt.err (!%p1513_p5)
}
 0x2ed   : > { %1314 = dma.vmem_to_hbm [thread:$0]  (%p1935_p13), %s1855_s14, 128, %s1853_s16, %s1009_s11  }
 0x2ee PF: > { %s1936_s18 = sld [smem:[#allocation13_spill]]  ;;  %s1937_s8 = sld [smem:[#allocation12_spill]] }
 0x2ef   : > { %s1938_s17 = sld [smem:[#allocation14_spill]] }
 0x2f4   : > { %p1331_p3 = scmp.ge.s32.totalorder %s1936_s18, 2  ;;  %s1036_s20 = sand.u32 1, %s1937_s8  }
 0x2f5   : > { %p1939_p6 = scmp.ne.s32.totalorder %s1938_s17, 0  ;;  %s1037_s24 = scalar_lea.sflag [#allocation5], %s1036_s20 }
 0x2f7   : > { %p1325_p12 = pnand %p1331_p3, %p1939_p6 }
 0x2f9   : > { %1550 = dma.done.wait (!%p1325_p12), %s1037_s24, 128  }
 0x2fa   : > { %1552 = vsyncadd (!%p1325_p12), %s1037_s24, 4294967168  ;;  %s24_s29 = sadd.s32 1, %s1936_s18   ;;  %s1940_s24 = smov %s1559_s25 }
 0x2fb   : > { %p21_p2 = scmp.ge.s32.totalorder %s24_s29, 9   ;;  %s1941_s25 = smov %s1563_s26 }
 0x2fc   : > { %s1942_s26 = smov %s1738_s21  ;;  %s1943_s27 = smov %s1571_s28 }
 0x2fd   : > { %s1944_s28 = smov %s1946_s19  ;;  %23 = sbr.rel (!%p21_p2) target bundleno = 7 (0x7), region = 108 }
 0x304   :  { %1042 = vsyncpa [#allocation4], 1 }
 0x305   :  { %1044 = vsyncpa [#allocation4 + $0x1], 1 }
 0x306   :  { %1045 = vsyncpa [#allocation7], 1 }
 0x307   :  { %1047 = vsyncpa [#allocation7 + $0x1], 1 }
 0x308   :  { %1048 = vsyncpa [#allocation5], 1 }
 0x309   :  { %1050 = vsyncpa [#allocation5 + $0x1], 1 }

</bundles_post_ra>
